<compile_context>
chip_gen: v6e
topology: v6e:2x2x1
jax: 0.10.0
libtpu: 0.0.40
codegen_flags: <defaults>
</compile_context>

<pallas_src>
import math

import jax
import jax.numpy as jnp
from jax.experimental import pallas as pl
from jax.experimental.pallas import tpu as pltpu


# ------------------------------ kernel body --------------------------------- #

def _make_ewl_kernel(has_bias, red_axis):
    """out[b, c] = sum_f x[b, c, f] * w[c, f] (+ bias[c]); the grid axis `red_axis`
    is the F reduction, accumulated in an f32 VMEM scratch that stays resident."""

    def kernel(*refs):
        if has_bias:
            x_ref, w_ref, b_ref, o_ref, acc_ref = refs
        else:
            x_ref, w_ref, o_ref, acc_ref = refs
            b_ref = None

        k = pl.program_id(red_axis)

        @pl.when(k == 0)
        def _():
            acc_ref[...] = jnp.zeros_like(acc_ref)

        xv = x_ref[...]                      # (TB, TC, TF)
        wv = w_ref[...]                      # (TC, TF)
        # Sub-32-bit inputs: multiply in f32 to match the f32 reference numerics.
        if xv.dtype.itemsize < 4:
            xv = xv.astype(jnp.float32)
        if wv.dtype.itemsize < 4:
            wv = wv.astype(jnp.float32)
        prod = xv * wv[None, :, :]                                   # VPU
        acc_ref[...] += jnp.sum(prod.astype(jnp.float32), axis=2)    # f32 accumulate

        @pl.when(k == pl.num_programs(red_axis) - 1)
        def _():
            out = acc_ref[...]
            if b_ref is not None:
                out = out + b_ref[...].astype(jnp.float32)   # (1, TC) bcast over TB
            o_ref[...] = out.reshape(o_ref.shape).astype(o_ref.dtype)

    return kernel


# -------------------------------- helpers ------------------------------------ #

def _round_up(n, m):
    return ((n + m - 1) // m) * m


def _vmem_capacity_bytes():
    """Physical VMEM of the local TPU; conservative (v7x-sized) if unknown."""
    try:
        info = pltpu.get_tpu_info()
        for name in ("vmem_capacity_bytes", "vmem_size_bytes", "vmem_bytes"):
            v = getattr(info, name, None)
            if v:
                return int(v)
    except Exception:
        pass
    return 64 * 1024 * 1024


def _choose_f_tiling(f_total, row_bytes, budget):
    """Pick the F-chunk size: a single full-dim block if it fits `budget`, else the
    largest multiple of 128 that divides f_total exactly and fits.  Returns (TF, Fp);
    Fp != f_total only in the rare no-divisor fallback (padding then required)."""
    if f_total * row_bytes <= budget:
        return f_total, f_total
    max_tf = max(128, (budget // max(row_bytes, 1)) // 128 * 128)
    tf = min(max_tf, (f_total // 128) * 128)
    while tf >= 128:
        if f_total % tf == 0:
            return tf, f_total
        tf -= 128
    # Last resort: no fitting 128-multiple divisor -> pad F (extra HBM copy, rare).
    tf = max_tf
    return tf, _round_up(f_total, tf)


# -------------------------------- wrapper ------------------------------------ #

def element_wise_layer(x, weight, bias=None, *, interpret=False, tile_budget_bytes=None):
    """out[b, c] = sum_f x[b, c, f] * weight[c, f] (+ bias[c]).  x: (B, C, F)."""
    B, C, F = x.shape
    assert weight.shape == (C, F)
    out_dtype = x.dtype
    itemsize = jnp.dtype(x.dtype).itemsize

    # ---- generation-aware VMEM budget ----------------------------------------
    vmem_phys = _vmem_capacity_bytes()
    if vmem_phys >= 96 * 1024 * 1024:            # v5e / v6e: 128 MiB physical
        vmem_limit = 64 * 1024 * 1024
        x_tile_budget = 16 * 1024 * 1024         # per pipeline buffer
        tb_cap = 32
    else:                                        # v7x (64 MiB) or unknown
        vmem_limit = 32 * 1024 * 1024
        x_tile_budget = 8 * 1024 * 1024
        tb_cap = 16
    if tile_budget_bytes is not None:            # test/override knob
        x_tile_budget = int(tile_budget_bytes)

    # ---- C tiling: full-dim block (no padding, masked stores are tiny) when it
    #      fits comfortably; 128-lane tiles otherwise (C edge blocks are safe). --
    TC = C if C <= 1024 else 128
    nC = -(-C // TC)

    # ---- F tiling (reduction axis): full-dim or an exact divisor of F ---------
    TB0 = B if B <= 8 else 8
    row_bytes = TB0 * TC * itemsize
    TF, Fp = _choose_f_tiling(F, row_bytes, x_tile_budget)

    # ---- B tiling: grow past 8 for large B (fewer weight re-reads / grid steps)
    if B <= 8:
        TB = B
    else:
        tb_fit = (x_tile_budget // (TC * TF * itemsize)) // 8 * 8
        TB = int(max(8, min(tb_cap, tb_fit, _round_up(B, 8))))
    nB = -(-B // TB)

    # ---- megacore path: when B*C collapses to one tile, split F into two
    #      parallel halves (f32 partials summed in the wrapper) so both v7x
    #      TensorCores get work.  Cheap no-op structurally on v5e/v6e. ----------
    if nB == 1 and nC == 1 and Fp == F and F >= 1024 and F % 256 == 0:
        f_half = F // 2
        TFh, fph = _choose_f_tiling(f_half, row_bytes, x_tile_budget)
        if fph == f_half:                        # exact tiling of each half
            nFh = f_half // TFh
            kernel = _make_ewl_kernel(has_bias=False, red_axis=1)
            cost = pl.CostEstimate(
                flops=2 * B * C * F, transcendentals=0,
                bytes_accessed=int(x.nbytes + weight.nbytes + 2 * B * C * 4))
            partials = pl.pallas_call(
                kernel,
                out_shape=jax.ShapeDtypeStruct((2, B, C), jnp.float32),
                grid=(2, nFh),
                in_specs=[
                    pl.BlockSpec((B, C, TFh), lambda s, k: (0, 0, s * nFh + k)),
                    pl.BlockSpec((C, TFh), lambda s, k: (0, s * nFh + k)),
                ],
                out_specs=pl.BlockSpec((1, B, C), lambda s, k: (s, 0, 0)),
                scratch_shapes=[pltpu.VMEM((B, C), jnp.float32)],
                compiler_params=pltpu.CompilerParams(
                    dimension_semantics=("parallel", "arbitrary"),
                    vmem_limit_bytes=vmem_limit),
                cost_estimate=cost,
                interpret=interpret,
            )(x, weight)
            out = partials[0] + partials[1]
            if bias is not None:
                out = out + bias[None, :].astype(jnp.float32)
            return out.astype(out_dtype)

    # ---- general path: (B-tiles, C-tiles, F-chunks) grid, no padding ----------
    xq, wq = x, weight
    if Fp != F:   # rare fallback only; zeros don't change the reduction
        xq = jnp.pad(x, ((0, 0), (0, 0), (0, Fp - F)))
        wq = jnp.pad(weight, ((0, 0), (0, Fp - F)))
    nF = Fp // TF

    in_specs = [
        pl.BlockSpec((TB, TC, TF), lambda i, j, k: (i, j, k)),   # x tile
        pl.BlockSpec((TC, TF), lambda i, j, k: (j, k)),          # weight tile
    ]
    args = [xq, wq]
    if bias is not None:
        in_specs.append(pl.BlockSpec((1, TC), lambda i, j, k: (0, j)))
        args.append(bias.reshape(1, C))

    kernel = _make_ewl_kernel(has_bias=bias is not None, red_axis=2)
    bias_bytes = 0 if bias is None else int(bias.nbytes) * nB
    cost = pl.CostEstimate(
        flops=2 * B * C * F, transcendentals=0,
        bytes_accessed=int(xq.nbytes) + int(wq.nbytes) * nB + bias_bytes
                       + B * C * itemsize)

    out = pl.pallas_call(
        kernel,
        out_shape=jax.ShapeDtypeStruct((B, C), out_dtype),
        grid=(nB, nC, nF),
        in_specs=in_specs,
        out_specs=pl.BlockSpec((TB, TC), lambda i, j, k: (i, j)),
        scratch_shapes=[pltpu.VMEM((TB, TC), jnp.float32)],
        compiler_params=pltpu.CompilerParams(
            # B/C tiles are independent -> parallel; F is the innermost reduction.
            dimension_semantics=("parallel", "parallel", "arbitrary"),
            vmem_limit_bytes=vmem_limit),
        cost_estimate=cost,
        interpret=interpret,
    )(*args)
    return out


# ------------------------------ reference ------------------------------------ #

def reference(x, weight, bias=None):
    out = jnp.sum(x.astype(jnp.float32) * weight[None, :, :].astype(jnp.float32),
                  axis=2)
    if bias is not None:
        out = out + bias[None, :].astype(jnp.float32)
    return out.astype(x.dtype)


# --------------------------------- main --------------------------------------- #

if __name__ == "__main__":
    key = jax.random.PRNGKey(0)

    def run_case(B, C, F, use_bias, case_key, **kw):
        k_x, k_w, k_b = jax.random.split(case_key, 3)
        # Mimic reset_parameters: uniform(-stdv, stdv), stdv = 1/sqrt(out_features)
        stdv = 1.0 / math.sqrt(F)
        w = jax.random.uniform(k_w, (C, F), jnp.float32, minval=-stdv, maxval=stdv)
        b = (jax.random.uniform(k_b, (C,), jnp.float32, minval=-stdv, maxval=stdv)
             if use_bias else None)
        x = jax.random.normal(k_x, (B, C, F), jnp.float32)

        out = jax.block_until_ready(element_wise_layer(x, w, b, **kw))
        ref = reference(x, w, b)
        assert out.shape == (B, C)
        assert jnp.allclose(out, ref, atol=1e-4, rtol=1e-4), \
            f"mismatch vs reference at {(B, C, F)}, bias={use_bias}, kw={kw}"

    keys = jax.random.split(key, 5)
    # Tiny smoke tests (full-dim blocks, single grid step, bias / no-bias paths).
    run_case(2, 4, 32, True, keys[0])
    run_case(2, 4, 32, False, keys[1])
    # Module-scale classifier shape: batch=4, num_classes=80, feat_dim=2048
    # (single parallel tile -> exercises the two-way F split / megacore path).
    run_case(4, 80, 2048, True, keys[2])
    # B > 8: TB grows past 8 with a partial edge block along B.
    run_case(12, 80, 512, True, keys[3])
    # Force the chunked-reduction (multi-step f32 accumulator) path with a tiny budget.
    run_case(12, 80, 2048, True, keys[4], tile_budget_bytes=256 * 1024)

    print("KERNEL_OK")
</pallas_src>

<mosaic_0001>
module attributes {stable_mosaic.version = 11 : i64} {
  func.func @kernel(%arg0: i32, %arg1: i32, %arg2: i32, %arg3: memref<2x4x32xf32, #tpu.memory_space<vmem>>, %arg4: memref<4x32xf32, #tpu.memory_space<vmem>>, %arg5: memref<1x4xf32, #tpu.memory_space<vmem>>, %arg6: memref<2x4xf32, #tpu.memory_space<vmem>>, %arg7: memref<2x4xf32, #tpu.memory_space<vmem>>) attributes {dimension_semantics = [#tpu.dimension_semantics<parallel>, #tpu.dimension_semantics<parallel>, #tpu.dimension_semantics<arbitrary>], iteration_bounds = array<i64: 1, 1, 1>, scalar_prefetch = 0 : i64, scratch_operands = 1 : i64, tpu.core_type = #tpu.core_type<tc>, window_params = [{transform_indices = @transform_0, window_bounds = array<i64: 2, 4, 32>}, {transform_indices = @transform_1, window_bounds = array<i64: 4, 32>}, {transform_indices = @transform_2, window_bounds = array<i64: 1, 4>}, {transform_indices = @transform_3, window_bounds = array<i64: 2, 4>}]} {
    %c0_i32 = arith.constant 0 : i32
    %0 = arith.cmpi eq, %arg2, %c0_i32 : i32
    %1 = arith.extui %0 : i1 to i32
    %c0_i32_0 = arith.constant 0 : i32
    %2 = arith.cmpi ne, %1, %c0_i32_0 : i32
    scf.if %2 {
      %cst_11 = arith.constant 0.000000e+00 : f32
      %15 = vector.broadcast %cst_11 : f32 to vector<2x4xf32>
      %c0_12 = arith.constant 0 : index
      %c0_13 = arith.constant 0 : index
      %16 = vector.load %arg7[%c0_12, %c0_13] : memref<2x4xf32, #tpu.memory_space<vmem>>, vector<2x4xf32>
      tpu.vector_store %arg7[%c0_12, %c0_13], %15 {strides = array<i32>} : memref<2x4xf32, #tpu.memory_space<vmem>>, vector<2x4xf32>,
    } else {
    }
    %c0 = arith.constant 0 : index
    %c0_1 = arith.constant 0 : index
    %c0_2 = arith.constant 0 : index
    %3 = vector.load %arg3[%c0, %c0_1, %c0_2] : memref<2x4x32xf32, #tpu.memory_space<vmem>>, vector<2x4x32xf32>
    %c0_3 = arith.constant 0 : index
    %c0_4 = arith.constant 0 : index
    %4 = vector.load %arg4[%c0_3, %c0_4] : memref<4x32xf32, #tpu.memory_space<vmem>>, vector<4x32xf32>
    %5 = vector.shape_cast %4 : vector<4x32xf32> to vector<1x4x32xf32>
    %6 = vector.broadcast %5 : vector<1x4x32xf32> to vector<2x4x32xf32>
    %7 = arith.mulf %3, %6 : vector<2x4x32xf32>
    %c0_5 = arith.constant 0 : index
    %c0_6 = arith.constant 0 : index
    %8 = vector.load %arg7[%c0_5, %c0_6] : memref<2x4xf32, #tpu.memory_space<vmem>>, vector<2x4xf32>
    %cst = arith.constant dense<0.000000e+00> : vector<2x4xf32>
    %9 = vector.multi_reduction <add>, %7, %cst [2] : vector<2x4x32xf32> to vector<2x4xf32>
    %10 = arith.addf %8, %9 : vector<2x4xf32>
    %c0_7 = arith.constant 0 : index
    %c0_8 = arith.constant 0 : index
    %11 = vector.load %arg7[%c0_7, %c0_8] : memref<2x4xf32, #tpu.memory_space<vmem>>, vector<2x4xf32>
    tpu.vector_store %arg7[%c0_7, %c0_8], %10 {strides = array<i32>} : memref<2x4xf32, #tpu.memory_space<vmem>>, vector<2x4xf32>,
    %c0_i32_9 = arith.constant 0 : i32
    %12 = arith.cmpi eq, %arg2, %c0_i32_9 : i32
    %13 = arith.extui %12 : i1 to i32
    %c0_i32_10 = arith.constant 0 : i32
    %14 = arith.cmpi ne, %13, %c0_i32_10 : i32
    scf.if %14 {
      %c0_11 = arith.constant 0 : index
      %c0_12 = arith.constant 0 : index
      %15 = vector.load %arg7[%c0_11, %c0_12] : memref<2x4xf32, #tpu.memory_space<vmem>>, vector<2x4xf32>
      %c0_13 = arith.constant 0 : index
      %c0_14 = arith.constant 0 : index
      %16 = vector.load %arg5[%c0_13, %c0_14] : memref<1x4xf32, #tpu.memory_space<vmem>>, vector<1x4xf32>
      %17 = vector.broadcast %16 : vector<1x4xf32> to vector<2x4xf32>
      %18 = arith.addf %15, %17 : vector<2x4xf32>
      %c0_15 = arith.constant 0 : index
      %c0_16 = arith.constant 0 : index
      %19 = vector.load %arg6[%c0_15, %c0_16] : memref<2x4xf32, #tpu.memory_space<vmem>>, vector<2x4xf32>
      tpu.vector_store %arg6[%c0_15, %c0_16], %18 {strides = array<i32>} : memref<2x4xf32, #tpu.memory_space<vmem>>, vector<2x4xf32>,
    } else {
    }
    return
  }
  func.func @transform_0(%arg0: i32, %arg1: i32, %arg2: i32) -> (i32, i32, i32) {
    %c0_i32 = arith.constant 0 : i32
    return %arg0, %arg1, %arg2 : i32, i32, i32
  }
  func.func @transform_1(%arg0: i32, %arg1: i32, %arg2: i32) -> (i32, i32) {
    %c0_i32 = arith.constant 0 : i32
    return %arg1, %arg2 : i32, i32
  }
  func.func @transform_2(%arg0: i32, %arg1: i32, %arg2: i32) -> (i32, i32) {
    %c0_i32 = arith.constant 0 : i32
    %c0_i32_0 = arith.constant 0 : i32
    return %c0_i32, %arg1 : i32, i32
  }
  func.func @transform_3(%arg0: i32, %arg1: i32, %arg2: i32) -> (i32, i32) {
    %c0_i32 = arith.constant 0 : i32
    return %arg0, %arg1 : i32, i32
  }
}

</mosaic_0001>

<bundles_post_ra>
// kernel: tpu_custom_call.1
= control target key start
LH: loop header
LB: loop body
LE: loop exit
PB: predicated region body
PF: predicated region fallthrough
CT: control target
= control target key end

     0   :  { %8 = vsyncpa [#allocation4], 0  ;;  %s221_s0 = inlined_call_operand.hbm [shape: f32[2,4,32], index: 0, kind: input, shape index: {}]   ;;  %s222_s1 = inlined_call_operand.hbm [shape: f32[4,32], index: 1, kind: input, shape index: {}]   ;;  %s223_s2 = inlined_call_operand.vmem [shape: f32[1,4], index: 2, kind: input, shape index: {}]   ;;  %s224_s3 = inlined_call_operand.hbm [shape: f32[2,4], index: 3, kind: output, shape index: {}]  }
   0x1   :  { %9 = vsyncpa [#allocation7], 0 }
   0x2   :  { %10 = vsyncpa [#allocation5], 0  ;;  %s180_s12 = smov [#allocation3]  }
   0x3   :  { %s16_s13 = sshll.u32 %s180_s12, 4  ;;  %s17_s13 = int_to_ptr.vmem [resolvable:$true] %s16_s13 }
   0x4   :  { %s122_s14 = scalar_lea.vmem %s17_s13, 128  ;;  %p127_p1 = scmp.lt.s32.totalorder %s17_s13, %s17_s13 }
   0x5   :  { %p123_p0 = scmp.ne.s32.totalorder %s17_s13, %s122_s14  ;;  %p128_p2 = scmp.lt.s32.totalorder %s122_s14, %s122_s14 }
   0x7   :  { %p129_p3 = por %p128_p2, %p127_p1 }
   0x9   :  { %p130_p4 = pnand %p129_p3, %p123_p0 }
   0xb   :  { %133 = shalt.err (!%p130_p4)
}
   0xc   :  { %s181_s15 = smov 64   ;;  %s182_s16 = smov 4  }
   0xd   :  { %22 = dma.hbm_to_vmem [thread:$0]  %s221_s0, 128, %s17_s13, [#allocation4], %s181_s15, %s181_s15, %s182_s16  }
   0xe   :  { %s183_s19 = smov [#allocation6]  }
   0xf   :  { %s29_s20 = sshll.u32 %s183_s19, 4  ;;  %s30_s20 = int_to_ptr.vmem [resolvable:$true] %s29_s20 }
  0x10   :  { %s142_s21 = scalar_lea.vmem %s30_s20, 64  ;;  %p147_p6 = scmp.lt.s32.totalorder %s30_s20, %s30_s20 }
  0x11   :  { %p143_p5 = scmp.ne.s32.totalorder %s30_s20, %s142_s21  ;;  %p148_p7 = scmp.lt.s32.totalorder %s142_s21, %s142_s21 }
  0x13   :  { %p149_p8 = por %p148_p7, %p147_p6 }
  0x15   :  { %p150_p9 = pnand %p149_p8, %p143_p5 }
  0x17   :  { %153 = shalt.err (!%p150_p9)
}
  0x18   :  { %32 = dma.hbm_to_vmem [thread:$0]  %s222_s1, 64, %s30_s20, [#allocation7]  }
  0x19   :  { %174 = dma.done.wait [#allocation4], 128  }
  0x1a   :  { %175 = vsyncadd [#allocation4], 4294967168 }
  0x1b   :  { %176 = dma.done.wait [#allocation7], 64  }
  0x1c   :  { %177 = vsyncadd [#allocation7], 4294967232  ;;  %vm53_vm0 = vcmask 257024   ;;  %v47_v0 = vld [vmem:[#allocation3] sm:$0xf]  ;;  %vm45_vm1 = vcmask 25600   ;;  %v62_v8 = vlaneseq }
  0x1d   :  { %v49_v1 = vld [vmem:[#allocation6] sm:$0xf]  ;;  %v48_v2 = vld [vmem:[#allocation3 + $0x4] sm:$0xf]  ;;  %v184_v7 = vmov 0.0   ;;  %vm72_vm2 = vcmask 1041409  }
  0x1e   :  { %v50_v3 = vmul.f32 %v49_v1, %v47_v0  ;;  %v51_v4 = vmul.f32 %v49_v1, %v48_v2  ;;  %46 = vst.msk [vmem:[#allocation2] sm:$0x3] %vm45_vm1, %v184_v7  ;;  %v63_v9 = vand.u32 127, %v62_v8  ;;  %v65_v10 = vshrl.u32 %v62_v8, 7  ;;  %v107_v19 = vld [vmem:[%s223_s2] ss:$0 sm:$0xff] }
  0x1f   :  { %s185_s24 = smov [#allocation8]  }
  0x20   :  { %v54_v5 = vsel %vm53_vm0, %v50_v3, 0.0  ;;  %v57_v6 = vsel %vm53_vm0, %v51_v4, 0.0  ;;  %v66_v12 = vsub.s32 %v63_v9, %v65_v10  ;;  %s97_s25 = sshll.u32 %s185_s24, 4  ;;  %s98_s25 = int_to_ptr.vmem [resolvable:$true] %s97_s25 }
  0x21   :  { %55 = vadd.xlane.f32.xlu0 %v54_v5  ;;  %s154_s26 = scalar_lea.vmem %s98_s25, 32  ;;  %p159_p11 = scmp.lt.s32.totalorder %s98_s25, %s98_s25 }
  0x22   :  { %p155_p10 = scmp.ne.s32.totalorder %s98_s25, %s154_s26  ;;  %p160_p12 = scmp.lt.s32.totalorder %s154_s26, %s154_s26 }
  0x24   :  { %p161_p13 = por %p160_p12, %p159_p11 }
  0x25   :  { %58 = vadd.xlane.f32.xlu0 %v57_v6  ;;  %v52_v16 = vld [vmem:[#allocation2] sm:$0x3] }
  0x26   :  { %p162_p0 = pnand %p161_p13, %p155_p10 }
  0xaa   :  { %v56_v11 = vpop.xlane.xlu0 %55 }
  0xab   :  { %v67_v14 = vrot.slane %v56_v11, %v66_v12 }
  0xae   :  { %v59_v13 = vpop.xlane.xlu0 %58 }
  0xaf   :  { %v71_v15 = vrot.slane %v59_v13, %v66_v12 }
  0xb1   :  { %v73_v17 = vsel %vm72_vm2, %v71_v15, %v67_v14 }
  0xb2   :  { %v75_v18 = vadd.f32 %v73_v17, %v52_v16 }
  0xb4   :  { %77 = vst.msk [vmem:[#allocation2] sm:$0x3] %vm45_vm1, %v75_v18 }
  0xbb   :  { %v81_v20 = vld [vmem:[#allocation2] sm:$0x3] }
  0xbc   :  { %v89_v21 = vadd.f32 %v107_v19, %v81_v20 }
  0xbe   :  { %90 = vst.msk [vmem:[#allocation8] sm:$0x3] %vm45_vm1, %v89_v21 }
  0xbf   :  { %165 = shalt.err (!%p162_p0)
}
  0xc0   :  { %100 = dma.vmem_to_hbm [thread:$0]  %s98_s25, 32, %s224_s3, [#allocation5]  }
  0xc1   :  { %178 = dma.done.wait [#allocation5], 32  }
  0xc2   :  { %179 = vsyncadd [#allocation5], 4294967264 }
  0xc3   :  { %104 = vsyncpa [#allocation4], 1 }
  0xc4   :  { %105 = vsyncpa [#allocation7], 1 }
  0xc5   :  { %106 = vsyncpa [#allocation5], 1 }

</bundles_post_ra>
